<compile_context>
chip_gen: v7x
topology: tpu7x:2x2x1
jax: 0.10.0
libtpu: 0.0.40
codegen_flags: <defaults>
</compile_context>

<pallas_src>
import functools
import math
from math import cos, atan

import numpy as np
import jax
import jax.numpy as jnp
from jax import lax
from jax.experimental import pallas as pl
from jax.experimental.pallas import tpu as pltpu

# constants from the PyTorch module
dx = 0.00859375
f = 8
CCD_width = 5.5
ox = CCD_width / 2
CCD_length = 7.7
oy = CCD_length / 2


def build_bn(h, w):
    """bn table from dis_conv.__init__ (pure index arithmetic, input-independent)."""
    bn = np.zeros((h, w))
    for i in range(h):
        for j in range(w):
            a0 = atan(dx * (j - ox) / f)
            bn[i, j] = math.floor((cos(a0) - 1.0) * (i - oy))
    return bn


def build_index_table(bn, H, W, Wc):
    """T[i, k, j] = row index of x gathered for output (i, j) and tap k
    (torch negative indices wrapped mod H), or -1 where the PyTorch loop never
    writes feature1[:, :, i, j] (the one-hot compare then yields all-zero).
    Only the first Wc columns are kept: j >= W//2 - 2 is always invalid."""
    T = np.full((H, 9, Wc), -1, dtype=np.int32)
    j = np.arange(Wc)
    jj = np.where(j >= 256, j % 256, j)
    for i in range(H):
        if i + 2 >= H:
            continue
        j2 = np.clip(j + 2, 0, W - 1)                    # clip only touches already-invalid j
        valid = (j + 2 < W // 2) & ((i + 2 + bn[i + 2, j2]) < H)
        if not np.any(valid):
            continue
        for k in range(9):
            r, c = k // 3, k % 3
            jjc = np.clip(jj + c, 0, W - 1)              # clip only touches already-invalid j
            tb = (i + r + bn[i + r, jjc]).astype(np.int64)
            tv = tb[valid]
            # torch negative indexing only defined for -H <= tb < H (ref would IndexError too)
            assert np.all((tv >= -H) & (tv < H)), "tb outside torch negative-index range"
            T[i, k, valid] = (tv % H).astype(np.int32)
    return T


def _pick_rows_per_step(H):
    """Rows per grid step: multiple of 8 (output-block sublane rule), >= 2 grid
    steps so the parallel axis can still shard across v7x's 2 TensorCores."""
    for r in (32, 24, 16, 8):
        if H % r == 0 and H // r >= 2:
            return r
    if H % 8 == 0:
        return 8
    return H


@functools.lru_cache(maxsize=None)
def _tables(H, W):
    bn = build_bn(H, W)
    # only columns j < W//2 - 2 can ever be non-zero -> compute only Wc lanes
    Wv = max(W // 2 - 2, 0)
    Wc = min(W, 128 * ((max(Wv, 1) + 127) // 128))       # multiple of 128 unless == W
    T = build_index_table(bn, H, W, Wc)                  # (H, 9, Wc) int32
    R = _pick_rows_per_step(H)
    nsteps = H // R
    valid = (T.reshape(nsteps, R, 9, Wc) != -1).any(axis=(1, 2, 3)).astype(np.int32)
    return T, valid, Wc, R


def dis_conv_kernel(valid_ref, t_ref, y_ref, o_ref, oh_ref, rows_ref):
    """One grid step = one block of R output rows.

    valid_ref : SMEM (nsteps,) int32    1 iff this row block has any valid output
    t_ref     : VMEM (R, 9, Wc) int32   gather-row table (-1 => contributes zero)
    y_ref     : VMEM (BO, 9*H) f32      weight-folded input, resident across grid
    o_ref     : VMEM (BO, R, W) f32     output block (b-major, oc-minor in BO)
    oh_ref    : VMEM (9*H, Wc) f32      scratch: stacked one-hot gather matrix
    rows_ref  : VMEM (R, BO, Wc) f32    scratch: per-row matmul results
    """
    R = t_ref.shape[0]
    Wc = t_ref.shape[2]
    BO, KH = y_ref.shape
    H = KH // 9

    # default: everything zero (dead blocks, the j >= Wc tail, rows/cols with T == -1)
    o_ref[...] = jnp.zeros_like(o_ref)

    @pl.when(valid_ref[pl.program_id(0)] != 0)
    def _compute():
        # hoisted: built once per grid step (JAX does not CSE broadcast/iota in loops)
        iota_h = lax.broadcasted_iota(jnp.int32, (H, Wc), 0)

        def row_body(r, carry):
            # build the stacked (9H, Wc) one-hot for output row r of this block;
            # idx == -1 never matches iota -> those columns/taps contribute zero.
            for k in range(9):                           # static unroll over the 3x3 taps
                idx_k = t_ref[r, k:k + 1, :]             # (1, Wc) read straight from the ref
                oh_ref[k * H:(k + 1) * H, :] = (iota_h == idx_k).astype(jnp.float32)
            # single MXU matmul per output row: (BO, 9H) @ (9H, Wc)
            rows_ref[r] = jnp.dot(y_ref[...], oh_ref[...],
                                  preferred_element_type=jnp.float32)
            return carry

        lax.fori_loop(0, R, row_body, 0)

        # static epilogue: lay the R computed rows into the (BO, R, W) output block
        for r in range(R):
            o_ref[:, r, :Wc] = rows_ref[r]


def dis_conv_forward(x, conv_w):
    """Pallas TPU forward of dis_conv.  x: (B, 3, H, W) NCHW, conv_w: (3, 3, 3, 3)."""
    B, C, H, W = x.shape
    assert C == 3 and conv_w.shape == (3, 3, 3, 3)
    OC = conv_w.shape[0]
    BO = B * OC

    T_np, valid_np, Wc, R = _tables(H, W)
    T = jnp.asarray(T_np)                                # (H, 9, Wc) int32
    valid = jnp.asarray(valid_np)                        # (nsteps,)  int32
    nsteps = H // R

    # Fold the 3x3x3x3 conv weight into the 3 used input columns (tiny XLA work):
    #   Y[k, b, oc, h] = sum_ic w[oc, ic, k//3, k%3] * x[b, ic, h, k%3]
    cols = np.array([0, 1, 2, 0, 1, 2, 0, 1, 2])
    xt = jnp.transpose(x[:, :, :, :3], (0, 3, 1, 2))                 # (B, 3, C, H)
    Xf = xt[:, cols, :, :]                                           # (B, 9, C, H)
    W2 = jnp.transpose(conv_w.reshape(OC, C, 9), (2, 0, 1))          # (9, OC, C)
    Y = jnp.einsum('koc,bkch->kboh', W2, Xf,
                   precision=jax.lax.Precision.HIGHEST)              # (9, B, OC, H)
    # K = 9H contraction layout: Ycat[bo, k*H + h], bo = b*OC + oc (b-major)
    Ycat = jnp.transpose(Y.reshape(9, BO, H), (1, 0, 2)).reshape(BO, 9 * H)
    Ycat = Ycat.astype(jnp.float32)

    # rough per-step VMEM estimate -> explicit scoped-VMEM limit (v5e default is 16 MiB)
    r8 = lambda n: -(-n // 8) * 8
    r128 = lambda n: -(-n // 128) * 128
    est = (2 * R * r8(9) * r128(Wc) * 4            # T block, double buffered
           + 2 * r8(BO) * r128(9 * H) * 4          # resident Ycat
           + 2 * BO * r8(R) * r128(W) * 4          # output block
           + r8(9 * H) * r128(Wc) * 4              # one-hot scratch
           + R * r8(BO) * r128(Wc) * 4             # row-result scratch
           + r8(H) * r128(Wc) * 4                  # iota
           + (2 << 20))
    vmem_limit = int(min(max(2 * est, 32 * 1024 * 1024), 56 * 1024 * 1024))

    kout = pl.pallas_call(
        dis_conv_kernel,
        out_shape=jax.ShapeDtypeStruct((BO, H, W), jnp.float32),
        grid_spec=pltpu.PrefetchScalarGridSpec(
            num_scalar_prefetch=1,                       # per-step any_valid flags (SMEM)
            grid=(nsteps,),
            in_specs=[
                pl.BlockSpec((R, 9, Wc), lambda i, v: (i, 0, 0)),
                pl.BlockSpec((BO, 9 * H), lambda i, v: (0, 0)),   # resident across grid
            ],
            out_specs=pl.BlockSpec((BO, R, W), lambda i, v: (0, i, 0)),
            scratch_shapes=[
                pltpu.VMEM((9 * H, Wc), jnp.float32),    # stacked one-hot
                pltpu.VMEM((R, BO, Wc), jnp.float32),    # per-row results
            ],
        ),
        compiler_params=pltpu.CompilerParams(
            dimension_semantics=("parallel",),
            vmem_limit_bytes=vmem_limit,
        ),
    )(valid, T, Ycat)

    # b-major / oc-minor ordering matches Ycat -> free reshape, no XLA transpose pass
    return kout.reshape(B, OC, H, W)


def reference_forward(x_np, w_np, bn):
    """Literal numpy transcription of dis_conv.forward (verification only)."""
    B, C, H, W = x_np.shape
    feat = np.zeros((B, C, H, W), dtype=np.float32)
    for i in range(H):
        for j in range(W):
            if i + 2 < H and j + 2 < W // 2:
                if i + 2 + bn[i + 2, j + 2] < H:
                    jj = j % 256 if j >= 256 else j
                    patch = np.zeros((B, C, 3, 3), dtype=np.float32)
                    for k in range(9):
                        r, c = k // 3, k % 3
                        tb = int(i + r + bn[i + r, jj + c])
                        patch[:, :, r, c] = x_np[:, :, tb, c]
                    feat[:, :, i, j] = np.einsum('dcrs,bcrs->bd', w_np, patch)
    return feat


if __name__ == "__main__":
    key = jax.random.PRNGKey(0)
    kx, kw = jax.random.split(key)
    B, C, H, W = 2, 3, 16, 16
    x = jax.random.normal(kx, (B, C, H, W), dtype=jnp.float32)
    # deterministic stand-in for nn.Conv2d(3, 3, 3, bias=False).weight
    conv_w = (jax.random.normal(kw, (3, 3, 3, 3), dtype=jnp.float32)
              / math.sqrt(3 * 3 * 3))

    out = jax.block_until_ready(dis_conv_forward(x, conv_w))

    ref = reference_forward(np.asarray(x), np.asarray(conv_w), build_bn(H, W))
    np.testing.assert_allclose(np.asarray(out), ref, rtol=1e-4, atol=1e-4)
    print("KERNEL_OK")
</pallas_src>

<mosaic_0001>
module attributes {stable_mosaic.version = 11 : i64} {
  func.func @dis_conv_kernel(%arg0: i32, %arg1: memref<2xi32, #tpu.memory_space<smem>>, %arg2: memref<8x9x16xi32, #tpu.memory_space<vmem>>, %arg3: memref<6x144xf32, #tpu.memory_space<vmem>>, %arg4: memref<6x8x16xf32, #tpu.memory_space<vmem>>, %arg5: memref<144x16xf32, #tpu.memory_space<vmem>>, %arg6: memref<8x6x16xf32, #tpu.memory_space<vmem>>) attributes {dimension_semantics = [#tpu.dimension_semantics<parallel>], iteration_bounds = array<i64: 2>, scalar_prefetch = 1 : i64, scratch_operands = 2 : i64, tpu.core_type = #tpu.core_type<tc>, window_params = [{transform_indices = @transform_0, window_bounds = array<i64: 8, 9, 16>}, {pipeline_mode = #tpu.pipeline_mode<synchronous>, transform_indices = @transform_1, window_bounds = array<i64: 6, 144>}, {transform_indices = @transform_2, window_bounds = array<i64: 6, 8, 16>}]} {
    %cst = arith.constant 0.000000e+00 : f32
    %0 = vector.broadcast %cst : f32 to vector<6x8x16xf32>
    %c0 = arith.constant 0 : index
    %c0_0 = arith.constant 0 : index
    %c0_1 = arith.constant 0 : index
    %1 = vector.load %arg4[%c0, %c0_0, %c0_1] : memref<6x8x16xf32, #tpu.memory_space<vmem>>, vector<6x8x16xf32>
    tpu.vector_store %arg4[%c0, %c0_0, %c0_1], %0 {strides = array<i32>} : memref<6x8x16xf32, #tpu.memory_space<vmem>>, vector<6x8x16xf32>,
    %2 = arith.index_cast %arg0 : i32 to index
    %3 = memref.load %arg1[%2] : memref<2xi32, #tpu.memory_space<smem>>
    %c0_i32 = arith.constant 0 : i32
    %4 = arith.cmpi ne, %3, %c0_i32 : i32
    %5 = arith.extui %4 : i1 to i32
    %c0_i32_2 = arith.constant 0 : i32
    %6 = arith.cmpi ne, %5, %c0_i32_2 : i32
    scf.if %6 {
      %7 = tpu.iota {dimensions = array<i32: 0>} : vector<16x16xi32>
      %c0_i32_3 = arith.constant 0 : i32
      %c8_i32 = arith.constant 8 : i32
      %8 = arith.addi %c0_i32_3, %c8_i32 : i32
      %c1_i32 = arith.constant 1 : i32
      scf.for %arg7 = %c0_i32_3 to %8 step %c1_i32  : i32 {
        %49 = arith.index_cast %arg7 : i32 to index
        %c0_46 = arith.constant 0 : index
        %c0_47 = arith.constant 0 : index
        %50 = vector.load %arg2[%49, %c0_46, %c0_47] : memref<8x9x16xi32, #tpu.memory_space<vmem>>, vector<1x1x16xi32>
        %51 = vector.shape_cast %50 : vector<1x1x16xi32> to vector<1x16xi32>
        %52 = vector.broadcast %51 : vector<1x16xi32> to vector<16x16xi32>
        %53 = arith.cmpi eq, %7, %52 : vector<16x16xi32>
        %54 = arith.extui %53 : vector<16x16xi1> to vector<16x16xi32>
        %55 = arith.sitofp %54 : vector<16x16xi32> to vector<16x16xf32>
        %c0_48 = arith.constant 0 : index
        %c0_49 = arith.constant 0 : index
        %56 = vector.load %arg5[%c0_48, %c0_49] : memref<144x16xf32, #tpu.memory_space<vmem>>, vector<16x16xf32>
        tpu.vector_store %arg5[%c0_48, %c0_49], %55 {strides = array<i32>} : memref<144x16xf32, #tpu.memory_space<vmem>>, vector<16x16xf32>,
        %57 = arith.index_cast %arg7 : i32 to index
        %c1_50 = arith.constant 1 : index
        %c0_51 = arith.constant 0 : index
        %58 = vector.load %arg2[%57, %c1_50, %c0_51] : memref<8x9x16xi32, #tpu.memory_space<vmem>>, vector<1x1x16xi32>
        %59 = vector.shape_cast %58 : vector<1x1x16xi32> to vector<1x16xi32>
        %60 = vector.broadcast %59 : vector<1x16xi32> to vector<16x16xi32>
        %61 = arith.cmpi eq, %7, %60 : vector<16x16xi32>
        %62 = arith.extui %61 : vector<16x16xi1> to vector<16x16xi32>
        %63 = arith.sitofp %62 : vector<16x16xi32> to vector<16x16xf32>
        %c16 = arith.constant 16 : index
        %c0_52 = arith.constant 0 : index
        %64 = vector.load %arg5[%c16, %c0_52] : memref<144x16xf32, #tpu.memory_space<vmem>>, vector<16x16xf32>
        tpu.vector_store %arg5[%c16, %c0_52], %63 {strides = array<i32>} : memref<144x16xf32, #tpu.memory_space<vmem>>, vector<16x16xf32>,
        %65 = arith.index_cast %arg7 : i32 to index
        %c2_53 = arith.constant 2 : index
        %c0_54 = arith.constant 0 : index
        %66 = vector.load %arg2[%65, %c2_53, %c0_54] : memref<8x9x16xi32, #tpu.memory_space<vmem>>, vector<1x1x16xi32>
        %67 = vector.shape_cast %66 : vector<1x1x16xi32> to vector<1x16xi32>
        %68 = vector.broadcast %67 : vector<1x16xi32> to vector<16x16xi32>
        %69 = arith.cmpi eq, %7, %68 : vector<16x16xi32>
        %70 = arith.extui %69 : vector<16x16xi1> to vector<16x16xi32>
        %71 = arith.sitofp %70 : vector<16x16xi32> to vector<16x16xf32>
        %c32 = arith.constant 32 : index
        %c0_55 = arith.constant 0 : index
        %72 = vector.load %arg5[%c32, %c0_55] : memref<144x16xf32, #tpu.memory_space<vmem>>, vector<16x16xf32>
        tpu.vector_store %arg5[%c32, %c0_55], %71 {strides = array<i32>} : memref<144x16xf32, #tpu.memory_space<vmem>>, vector<16x16xf32>,
        %73 = arith.index_cast %arg7 : i32 to index
        %c3_56 = arith.constant 3 : index
        %c0_57 = arith.constant 0 : index
        %74 = vector.load %arg2[%73, %c3_56, %c0_57] : memref<8x9x16xi32, #tpu.memory_space<vmem>>, vector<1x1x16xi32>
        %75 = vector.shape_cast %74 : vector<1x1x16xi32> to vector<1x16xi32>
        %76 = vector.broadcast %75 : vector<1x16xi32> to vector<16x16xi32>
        %77 = arith.cmpi eq, %7, %76 : vector<16x16xi32>
        %78 = arith.extui %77 : vector<16x16xi1> to vector<16x16xi32>
        %79 = arith.sitofp %78 : vector<16x16xi32> to vector<16x16xf32>
        %c48 = arith.constant 48 : index
        %c0_58 = arith.constant 0 : index
        %80 = vector.load %arg5[%c48, %c0_58] : memref<144x16xf32, #tpu.memory_space<vmem>>, vector<16x16xf32>
        tpu.vector_store %arg5[%c48, %c0_58], %79 {strides = array<i32>} : memref<144x16xf32, #tpu.memory_space<vmem>>, vector<16x16xf32>,
        %81 = arith.index_cast %arg7 : i32 to index
        %c4_59 = arith.constant 4 : index
        %c0_60 = arith.constant 0 : index
        %82 = vector.load %arg2[%81, %c4_59, %c0_60] : memref<8x9x16xi32, #tpu.memory_space<vmem>>, vector<1x1x16xi32>
        %83 = vector.shape_cast %82 : vector<1x1x16xi32> to vector<1x16xi32>
        %84 = vector.broadcast %83 : vector<1x16xi32> to vector<16x16xi32>
        %85 = arith.cmpi eq, %7, %84 : vector<16x16xi32>
        %86 = arith.extui %85 : vector<16x16xi1> to vector<16x16xi32>
        %87 = arith.sitofp %86 : vector<16x16xi32> to vector<16x16xf32>
        %c64 = arith.constant 64 : index
        %c0_61 = arith.constant 0 : index
        %88 = vector.load %arg5[%c64, %c0_61] : memref<144x16xf32, #tpu.memory_space<vmem>>, vector<16x16xf32>
        tpu.vector_store %arg5[%c64, %c0_61], %87 {strides = array<i32>} : memref<144x16xf32, #tpu.memory_space<vmem>>, vector<16x16xf32>,
        %89 = arith.index_cast %arg7 : i32 to index
        %c5_62 = arith.constant 5 : index
        %c0_63 = arith.constant 0 : index
        %90 = vector.load %arg2[%89, %c5_62, %c0_63] : memref<8x9x16xi32, #tpu.memory_space<vmem>>, vector<1x1x16xi32>
        %91 = vector.shape_cast %90 : vector<1x1x16xi32> to vector<1x16xi32>
        %92 = vector.broadcast %91 : vector<1x16xi32> to vector<16x16xi32>
        %93 = arith.cmpi eq, %7, %92 : vector<16x16xi32>
        %94 = arith.extui %93 : vector<16x16xi1> to vector<16x16xi32>
        %95 = arith.sitofp %94 : vector<16x16xi32> to vector<16x16xf32>
        %c80 = arith.constant 80 : index
        %c0_64 = arith.constant 0 : index
        %96 = vector.load %arg5[%c80, %c0_64] : memref<144x16xf32, #tpu.memory_space<vmem>>, vector<16x16xf32>
        tpu.vector_store %arg5[%c80, %c0_64], %95 {strides = array<i32>} : memref<144x16xf32, #tpu.memory_space<vmem>>, vector<16x16xf32>,
        %97 = arith.index_cast %arg7 : i32 to index
        %c6_65 = arith.constant 6 : index
        %c0_66 = arith.constant 0 : index
        %98 = vector.load %arg2[%97, %c6_65, %c0_66] : memref<8x9x16xi32, #tpu.memory_space<vmem>>, vector<1x1x16xi32>
        %99 = vector.shape_cast %98 : vector<1x1x16xi32> to vector<1x16xi32>
        %100 = vector.broadcast %99 : vector<1x16xi32> to vector<16x16xi32>
        %101 = arith.cmpi eq, %7, %100 : vector<16x16xi32>
        %102 = arith.extui %101 : vector<16x16xi1> to vector<16x16xi32>
        %103 = arith.sitofp %102 : vector<16x16xi32> to vector<16x16xf32>
        %c96 = arith.constant 96 : index
        %c0_67 = arith.constant 0 : index
        %104 = vector.load %arg5[%c96, %c0_67] : memref<144x16xf32, #tpu.memory_space<vmem>>, vector<16x16xf32>
        tpu.vector_store %arg5[%c96, %c0_67], %103 {strides = array<i32>} : memref<144x16xf32, #tpu.memory_space<vmem>>, vector<16x16xf32>,
        %105 = arith.index_cast %arg7 : i32 to index
        %c7_68 = arith.constant 7 : index
        %c0_69 = arith.constant 0 : index
        %106 = vector.load %arg2[%105, %c7_68, %c0_69] : memref<8x9x16xi32, #tpu.memory_space<vmem>>, vector<1x1x16xi32>
        %107 = vector.shape_cast %106 : vector<1x1x16xi32> to vector<1x16xi32>
        %108 = vector.broadcast %107 : vector<1x16xi32> to vector<16x16xi32>
        %109 = arith.cmpi eq, %7, %108 : vector<16x16xi32>
        %110 = arith.extui %109 : vector<16x16xi1> to vector<16x16xi32>
        %111 = arith.sitofp %110 : vector<16x16xi32> to vector<16x16xf32>
        %c112 = arith.constant 112 : index
        %c0_70 = arith.constant 0 : index
        %112 = vector.load %arg5[%c112, %c0_70] : memref<144x16xf32, #tpu.memory_space<vmem>>, vector<16x16xf32>
        tpu.vector_store %arg5[%c112, %c0_70], %111 {strides = array<i32>} : memref<144x16xf32, #tpu.memory_space<vmem>>, vector<16x16xf32>,
        %113 = arith.index_cast %arg7 : i32 to index
        %c8 = arith.constant 8 : index
        %c0_71 = arith.constant 0 : index
        %114 = vector.load %arg2[%113, %c8, %c0_71] : memref<8x9x16xi32, #tpu.memory_space<vmem>>, vector<1x1x16xi32>
        %115 = vector.shape_cast %114 : vector<1x1x16xi32> to vector<1x16xi32>
        %116 = vector.broadcast %115 : vector<1x16xi32> to vector<16x16xi32>
        %117 = arith.cmpi eq, %7, %116 : vector<16x16xi32>
        %118 = arith.extui %117 : vector<16x16xi1> to vector<16x16xi32>
        %119 = arith.sitofp %118 : vector<16x16xi32> to vector<16x16xf32>
        %c128 = arith.constant 128 : index
        %c0_72 = arith.constant 0 : index
        %120 = vector.load %arg5[%c128, %c0_72] : memref<144x16xf32, #tpu.memory_space<vmem>>, vector<16x16xf32>
        tpu.vector_store %arg5[%c128, %c0_72], %119 {strides = array<i32>} : memref<144x16xf32, #tpu.memory_space<vmem>>, vector<16x16xf32>,
        %c0_73 = arith.constant 0 : index
        %c0_74 = arith.constant 0 : index
        %121 = vector.load %arg3[%c0_73, %c0_74] : memref<6x144xf32, #tpu.memory_space<vmem>>, vector<6x144xf32>
        %c0_75 = arith.constant 0 : index
        %c0_76 = arith.constant 0 : index
        %122 = vector.load %arg5[%c0_75, %c0_76] : memref<144x16xf32, #tpu.memory_space<vmem>>, vector<144x16xf32>
        %cst_77 = arith.constant dense<0.000000e+00> : vector<6x16xf32>
        %123 = tpu.matmul %121, %122, %cst_77 {dimension_numbers = #tpu.dot_dimension_numbers<[1], [0], [0], [1], [0, 0, 1, 1], [], []>} : vector<6x144xf32>, vector<144x16xf32>, vector<6x16xf32> -> vector<6x16xf32>
        %124 = arith.index_cast %arg7 : i32 to index
        %c0_78 = arith.constant 0 : index
        %c0_79 = arith.constant 0 : index
        %125 = vector.load %arg6[%124, %c0_78, %c0_79] : memref<8x6x16xf32, #tpu.memory_space<vmem>>, vector<1x6x16xf32>
        %126 = vector.shape_cast %125 : vector<1x6x16xf32> to vector<6x16xf32>
        %127 = vector.shape_cast %123 : vector<6x16xf32> to vector<1x6x16xf32>
        tpu.vector_store %arg6[%124, %c0_78, %c0_79], %127 {strides = array<i32>} : memref<8x6x16xf32, #tpu.memory_space<vmem>>, vector<1x6x16xf32>,
      }
      %c8_i32_4 = arith.constant 8 : i32
      %c0_5 = arith.constant 0 : index
      %c0_6 = arith.constant 0 : index
      %c0_7 = arith.constant 0 : index
      %9 = vector.load %arg6[%c0_5, %c0_6, %c0_7] : memref<8x6x16xf32, #tpu.memory_space<vmem>>, vector<1x6x16xf32>
      %10 = vector.shape_cast %9 : vector<1x6x16xf32> to vector<6x16xf32>
      %c0_8 = arith.constant 0 : index
      %c0_9 = arith.constant 0 : index
      %c0_10 = arith.constant 0 : index
      %11 = vector.load %arg4[%c0_8, %c0_9, %c0_10] : memref<6x8x16xf32, #tpu.memory_space<vmem>>, vector<6x1x16xf32>
      %12 = vector.shape_cast %11 : vector<6x1x16xf32> to vector<6x16xf32>
      %13 = vector.shape_cast %10 : vector<6x16xf32> to vector<6x1x16xf32>
      tpu.vector_store %arg4[%c0_8, %c0_9, %c0_10], %13 {strides = array<i32>} : memref<6x8x16xf32, #tpu.memory_space<vmem>>, vector<6x1x16xf32>,
      %c1 = arith.constant 1 : index
      %c0_11 = arith.constant 0 : index
      %c0_12 = arith.constant 0 : index
      %14 = vector.load %arg6[%c1, %c0_11, %c0_12] : memref<8x6x16xf32, #tpu.memory_space<vmem>>, vector<1x6x16xf32>
      %15 = vector.shape_cast %14 : vector<1x6x16xf32> to vector<6x16xf32>
      %c0_13 = arith.constant 0 : index
      %c1_14 = arith.constant 1 : index
      %c0_15 = arith.constant 0 : index
      %16 = vector.load %arg4[%c0_13, %c1_14, %c0_15] : memref<6x8x16xf32, #tpu.memory_space<vmem>>, vector<6x1x16xf32>
      %17 = vector.shape_cast %16 : vector<6x1x16xf32> to vector<6x16xf32>
      %18 = vector.shape_cast %15 : vector<6x16xf32> to vector<6x1x16xf32>
      tpu.vector_store %arg4[%c0_13, %c1_14, %c0_15], %18 {strides = array<i32>} : memref<6x8x16xf32, #tpu.memory_space<vmem>>, vector<6x1x16xf32>,
      %c2 = arith.constant 2 : index
      %c0_16 = arith.constant 0 : index
      %c0_17 = arith.constant 0 : index
      %19 = vector.load %arg6[%c2, %c0_16, %c0_17] : memref<8x6x16xf32, #tpu.memory_space<vmem>>, vector<1x6x16xf32>
      %20 = vector.shape_cast %19 : vector<1x6x16xf32> to vector<6x16xf32>
      %c0_18 = arith.constant 0 : index
      %c2_19 = arith.constant 2 : index
      %c0_20 = arith.constant 0 : index
      %21 = vector.load %arg4[%c0_18, %c2_19, %c0_20] : memref<6x8x16xf32, #tpu.memory_space<vmem>>, vector<6x1x16xf32>
      %22 = vector.shape_cast %21 : vector<6x1x16xf32> to vector<6x16xf32>
      %23 = vector.shape_cast %20 : vector<6x16xf32> to vector<6x1x16xf32>
      tpu.vector_store %arg4[%c0_18, %c2_19, %c0_20], %23 {strides = array<i32>} : memref<6x8x16xf32, #tpu.memory_space<vmem>>, vector<6x1x16xf32>,
      %c3 = arith.constant 3 : index
      %c0_21 = arith.constant 0 : index
      %c0_22 = arith.constant 0 : index
      %24 = vector.load %arg6[%c3, %c0_21, %c0_22] : memref<8x6x16xf32, #tpu.memory_space<vmem>>, vector<1x6x16xf32>
      %25 = vector.shape_cast %24 : vector<1x6x16xf32> to vector<6x16xf32>
      %c0_23 = arith.constant 0 : index
      %c3_24 = arith.constant 3 : index
      %c0_25 = arith.constant 0 : index
      %26 = vector.load %arg4[%c0_23, %c3_24, %c0_25] : memref<6x8x16xf32, #tpu.memory_space<vmem>>, vector<6x1x16xf32>
      %27 = vector.shape_cast %26 : vector<6x1x16xf32> to vector<6x16xf32>
      %28 = vector.shape_cast %25 : vector<6x16xf32> to vector<6x1x16xf32>
      tpu.vector_store %arg4[%c0_23, %c3_24, %c0_25], %28 {strides = array<i32>} : memref<6x8x16xf32, #tpu.memory_space<vmem>>, vector<6x1x16xf32>,
      %c4 = arith.constant 4 : index
      %c0_26 = arith.constant 0 : index
      %c0_27 = arith.constant 0 : index
      %29 = vector.load %arg6[%c4, %c0_26, %c0_27] : memref<8x6x16xf32, #tpu.memory_space<vmem>>, vector<1x6x16xf32>
      %30 = vector.shape_cast %29 : vector<1x6x16xf32> to vector<6x16xf32>
      %c0_28 = arith.constant 0 : index
      %c4_29 = arith.constant 4 : index
      %c0_30 = arith.constant 0 : index
      %31 = vector.load %arg4[%c0_28, %c4_29, %c0_30] : memref<6x8x16xf32, #tpu.memory_space<vmem>>, vector<6x1x16xf32>
      %32 = vector.shape_cast %31 : vector<6x1x16xf32> to vector<6x16xf32>
      %33 = vector.shape_cast %30 : vector<6x16xf32> to vector<6x1x16xf32>
      tpu.vector_store %arg4[%c0_28, %c4_29, %c0_30], %33 {strides = array<i32>} : memref<6x8x16xf32, #tpu.memory_space<vmem>>, vector<6x1x16xf32>,
      %c5 = arith.constant 5 : index
      %c0_31 = arith.constant 0 : index
      %c0_32 = arith.constant 0 : index
      %34 = vector.load %arg6[%c5, %c0_31, %c0_32] : memref<8x6x16xf32, #tpu.memory_space<vmem>>, vector<1x6x16xf32>
      %35 = vector.shape_cast %34 : vector<1x6x16xf32> to vector<6x16xf32>
      %c0_33 = arith.constant 0 : index
      %c5_34 = arith.constant 5 : index
      %c0_35 = arith.constant 0 : index
      %36 = vector.load %arg4[%c0_33, %c5_34, %c0_35] : memref<6x8x16xf32, #tpu.memory_space<vmem>>, vector<6x1x16xf32>
      %37 = vector.shape_cast %36 : vector<6x1x16xf32> to vector<6x16xf32>
      %38 = vector.shape_cast %35 : vector<6x16xf32> to vector<6x1x16xf32>
      tpu.vector_store %arg4[%c0_33, %c5_34, %c0_35], %38 {strides = array<i32>} : memref<6x8x16xf32, #tpu.memory_space<vmem>>, vector<6x1x16xf32>,
      %c6 = arith.constant 6 : index
      %c0_36 = arith.constant 0 : index
      %c0_37 = arith.constant 0 : index
      %39 = vector.load %arg6[%c6, %c0_36, %c0_37] : memref<8x6x16xf32, #tpu.memory_space<vmem>>, vector<1x6x16xf32>
      %40 = vector.shape_cast %39 : vector<1x6x16xf32> to vector<6x16xf32>
      %c0_38 = arith.constant 0 : index
      %c6_39 = arith.constant 6 : index
      %c0_40 = arith.constant 0 : index
      %41 = vector.load %arg4[%c0_38, %c6_39, %c0_40] : memref<6x8x16xf32, #tpu.memory_space<vmem>>, vector<6x1x16xf32>
      %42 = vector.shape_cast %41 : vector<6x1x16xf32> to vector<6x16xf32>
      %43 = vector.shape_cast %40 : vector<6x16xf32> to vector<6x1x16xf32>
      tpu.vector_store %arg4[%c0_38, %c6_39, %c0_40], %43 {strides = array<i32>} : memref<6x8x16xf32, #tpu.memory_space<vmem>>, vector<6x1x16xf32>,
      %c7 = arith.constant 7 : index
      %c0_41 = arith.constant 0 : index
      %c0_42 = arith.constant 0 : index
      %44 = vector.load %arg6[%c7, %c0_41, %c0_42] : memref<8x6x16xf32, #tpu.memory_space<vmem>>, vector<1x6x16xf32>
      %45 = vector.shape_cast %44 : vector<1x6x16xf32> to vector<6x16xf32>
      %c0_43 = arith.constant 0 : index
      %c7_44 = arith.constant 7 : index
      %c0_45 = arith.constant 0 : index
      %46 = vector.load %arg4[%c0_43, %c7_44, %c0_45] : memref<6x8x16xf32, #tpu.memory_space<vmem>>, vector<6x1x16xf32>
      %47 = vector.shape_cast %46 : vector<6x1x16xf32> to vector<6x16xf32>
      %48 = vector.shape_cast %45 : vector<6x16xf32> to vector<6x1x16xf32>
      tpu.vector_store %arg4[%c0_43, %c7_44, %c0_45], %48 {strides = array<i32>} : memref<6x8x16xf32, #tpu.memory_space<vmem>>, vector<6x1x16xf32>,
    } else {
    }
    return
  }
  func.func @transform_0(%arg0: i32, %arg1: memref<2xi32, #tpu.memory_space<smem>>) -> (i32, i32, i32) {
    %c0_i32 = arith.constant 0 : i32
    %c0_i32_0 = arith.constant 0 : i32
    %c0_i32_1 = arith.constant 0 : i32
    return %arg0, %c0_i32, %c0_i32_0 : i32, i32, i32
  }
  func.func @transform_1(%arg0: i32, %arg1: memref<2xi32, #tpu.memory_space<smem>>) -> (i32, i32) {
    %c0_i32 = arith.constant 0 : i32
    %c0_i32_0 = arith.constant 0 : i32
    %c0_i32_1 = arith.constant 0 : i32
    return %c0_i32, %c0_i32_0 : i32, i32
  }
  func.func @transform_2(%arg0: i32, %arg1: memref<2xi32, #tpu.memory_space<smem>>) -> (i32, i32, i32) {
    %c0_i32 = arith.constant 0 : i32
    %c0_i32_0 = arith.constant 0 : i32
    %c0_i32_1 = arith.constant 0 : i32
    return %c0_i32, %arg0, %c0_i32_0 : i32, i32, i32
  }
}

</mosaic_0001>

<bundles_post_ra>
// kernel: tpu_custom_call.1
= control target key start
LH: loop header
LB: loop body
LE: loop exit
PB: predicated region body
PF: predicated region fallthrough
CT: control target
= control target key end

     0   :  { %s1593_s0 = inlined_call_operand.vmem [shape: s32[2], index: 0, kind: input, shape index: {}]   ;;  %s1594_s1 = inlined_call_operand.vmem [shape: s32[16,9,16], index: 1, kind: input, shape index: {}]   ;;  %s1595_s2 = inlined_call_operand.vmem [shape: f32[6,144], index: 2, kind: input, shape index: {}]   ;;  %s1596_s3 = inlined_call_operand.hbm [shape: f32[6,16,16], index: 3, kind: output, shape index: {}]  }
   0x1   :  { %s8_s14 = sshll.u32 %s1593_s0, 4  ;;  %s9_s14 = int_to_ptr.vmem [resolvable:$true] %s8_s14 }
   0x2   :  { %s1096_s15 = scalar_lea.vmem %s9_s14, 16  ;;  %p1101_p1 = scmp.lt.s32.totalorder %s9_s14, %s9_s14 }
   0x3   :  { %p1097_p0 = scmp.ne.s32.totalorder %s9_s14, %s1096_s15  ;;  %p1102_p2 = scmp.lt.s32.totalorder %s1096_s15, %s1096_s15 }
   0x5   :  { %p1103_p3 = por %p1102_p2, %p1101_p1 }
   0x7   :  { %p1104_p4 = pnand %p1103_p3, %p1097_p0 }
   0x9   :  { %1107 = shalt.err (!%p1104_p4)  }
   0xa   :  { %s1182_s16 = smov [#allocation5]  }
   0xb   :  { %11 = dma.vmem_to_smem %s9_s14, 16, %s1182_s16, [#allocation4] }
   0xc   :  { %1156 = dma.done.wait [#allocation4], 16 }
   0xd   :  { %1157 = vsyncadd [#allocation4], 4294967280 }
   0xe   :  { %13 = sfence }
   0xf   :  { %14 = vsyncpa [#allocation7], 0 }
  0x10   :  { %16 = vsyncpa [#allocation7 + $0x1], 0  ;;  %s1214_s17 = smov 0   ;;  %s1216_s18 = smov 0  }
  0x11   :  { %s1218_s0 = smov 0   ;;  %s1220_s19 = smov 0  }
  0x12 LB: > { %s1235_s20 = sadd.s32 4294967295, %s1176_s19   ;;  %s971_s21 = sadd.s32 4294967294, %s1176_s19   ;;  %s1176_s19 = sphi %s1220_s19, %s1602_s19   ;;  %s1172_s0 = sphi %s1218_s0, %s1601_s0   ;;  %s1168_s18 = sphi %s1216_s18, %s1600_s18   ;;  %s1164_s17 = sphi %s1214_s17, %s1599_s17  }
  0x13   : > { %s1239_s22 = sadd.s32 1, %s1176_s19   ;;  %s76_s23 = sadd.s32 1, %s1172_s0 }
  0x14   : > { %s73_s24 = ssub.s32 %s1176_s19, %s1239_s22  ;;  %p86_p5 = scmp.ne.s32.totalorder %s1172_s0, %s1168_s18 }
  0x15   : > { %p74_p6 = scmp.eq.s32.totalorder %s73_s24, 0  ;;  %p87_p7 = scmp.eq.s32.totalorder %s1235_s20, 1 }
  0x16   : > { %p92_p8 = scmp.ne.s32.totalorder %s1168_s18, %s1164_s17  ;;  %p93_p9 = scmp.eq.s32.totalorder %s971_s21, 1 }
  0x17   : > { %s1250_s25 = scalar_select %p74_p6, %s1172_s0, %s76_s23  }
  0x18   : > { %p1252_p10 = por %p87_p7, %p86_p5  ;;  %p1256_p11 = por %p93_p9, %p92_p8 }
  0x19   : > { %p974_p12 = scmp.ge.s32.totalorder %s1176_s19, 1  ;;  %p124_p13 = scmp.lt.s32.totalorder %s1176_s19, 3 }
  0x1b   : > { %p125_p0 = pnand %p974_p12, %p124_p13 }
  0x1c   : > { %s144_s28 = sand.u32 (!%p125_p0), 1, %s1168_s18   ;;  %s975_s29 = sshll.u32 (!%p125_p0), %s1235_s20, 3  ;;  %vm154_vm0 = vcmask (!%p125_p0), 130048   ;;  %v1183_v0 = vmov (!%p125_p0), 0.0  }
  0x1d   : > { %128 = sbr.rel (%p125_p0) target bundleno = 372 (0x174), region = 28  ;;  %p148_p1 = scmp.lt.s32.totalorder (!%p125_p0), %s975_s29, 15 }
  0x1e   : > { %s1040_s30 = smul.u32 (!%p125_p0), 48, %s144_s28  ;;  %s161_s4 = sld [smem:[#allocation5 + %s1235_s20]] (!%p125_p0) }
  0x20   : > { %s1267_s5 = scalar_lea.vmem (!%p125_p0), [#allocation6], %s1040_s30 }
  0x21   : > { %155 = vst.msk [vmem:[%s1267_s5] sm:$0xff] (!%p125_p0), %vm154_vm0, %v1183_v0  ;;  %156 = vst.msk [vmem:[%s1267_s5 + $0x8] sm:$0xff] (!%p125_p0), %vm154_vm0, %v1183_v0 }
  0x22   : > { %157 = vst.msk [vmem:[%s1267_s5 + $0x10] sm:$0xff] (!%p125_p0), %vm154_vm0, %v1183_v0  ;;  %158 = vst.msk [vmem:[%s1267_s5 + $0x18] sm:$0xff] (!%p125_p0), %vm154_vm0, %v1183_v0 }
  0x23   : > { %159 = vst.msk [vmem:[%s1267_s5 + $0x20] sm:$0xff] (!%p125_p0), %vm154_vm0, %v1183_v0  ;;  %160 = vst.msk [vmem:[%s1267_s5 + $0x28] sm:$0xff] (!%p125_p0), %vm154_vm0, %v1183_v0 }
  0x24   : > { %s1604_s29 = smov (!%p148_p1, %s975_s29), 15  ;;  %p978_p2 = scmp.eq.s32.totalorder %s161_s4, 0 }
  0x25   : > { %s1012_s6 = sshll.u32 %s1604_s29, 4  ;;  %v166_v1 = vlaneseq (!%p978_p2)  ;;  %s1291_s10 = smov (!%p978_p2), 0  }
  0x26   : > { %s1284_s9 = scalar_lea.vmem %s1594_s1, %s1012_s6  ;;  %165 = sbr.rel (%p978_p2) target bundleno = 346 (0x15a), region = 32 }
  0x27   : > { %v1286_v2 = vshrl.u32 (!%p978_p2), %v166_v1, 7 }
  0x29   : > { %v1289_v3 = vadd.s32 (!%p978_p2), 8, %v1286_v2 }
  0x2d LB: >> { %v295_v4 = vld [vmem:[%s1595_s2 + $0x8] sm:$0x3f]  ;;  %v1184_v5 = vmov 0.0|0.0   ;;  %s979_s13 = sshll.u32 %s1180_s10, 4  ;;  %v1185_v11 = vmov 0.0   ;;  %s1008_s21 = sshll.u32 %s1180_s10, 3  ;;  %s1180_s10 = sphi %s1291_s10, %s174_s10  }
  0x2e   : >> { %1013 = vmatprep.subr.bf16.mxu0 %v1184_v5  ;;  %1007 = vmatprep.mubr.msk.f32.mxu0 %vm154_vm0, %v295_v4  ;;  %s1303_s14 = scalar_lea.vmem %s1284_s9, %s979_s13  ;;  %v294_v61 = vld [vmem:[%s1595_s2] sm:$0x3f]  ;;  %s388_s23 = scalar_lea.vmem [#allocation3], %s1008_s21 }
  0x2f   : >> { %v980_v6 = vld [vmem:[%s1303_s14] ss:$0 sm:$0xff]  ;;  %v983_v7 = vld [vmem:[%s1303_s14 + $0x1] ss:$0 sm:$0xff]  ;;  %v986_v8 = vld [vmem:[%s1303_s14 + $0x2] ss:$0 sm:$0xff] }
  0x30   : >> { %vm182_vm1 = vcmp.eq.s32.totalorder %v1286_v2, %v980_v6  ;;  %vm183_vm2 = vcmp.eq.s32.totalorder %v1289_v3, %v980_v6  ;;  %vm195_vm3 = vcmp.eq.s32.totalorder %v1286_v2, %v983_v7  ;;  %vm196_vm4 = vcmp.eq.s32.totalorder %v1289_v3, %v983_v7  ;;  %v989_v9 = vld [vmem:[%s1303_s14 + $0x3] ss:$0 sm:$0xff]  ;;  %v992_v10 = vld [vmem:[%s1303_s14 + $0x4] ss:$0 sm:$0xff]  ;;  %v995_v16 = vld [vmem:[%s1303_s14 + $0x5] ss:$0 sm:$0xff] }
  0x31   : >> { %v981_v12 = vsel %vm182_vm1, 1.0, %v1185_v11  ;;  %v982_v13 = vsel %vm183_vm2, 1.0, %v1185_v11  ;;  %v984_v14 = vsel %vm195_vm3, 1.0, %v1185_v11  ;;  %v985_v15 = vsel %vm196_vm4, 1.0, %v1185_v11  ;;  %v998_v17 = vld [vmem:[%s1303_s14 + $0x6] ss:$0 sm:$0xff] }
  0x32   : >> { %188 = vst.msk [vmem:[#allocation2] sm:$0xff] %vm154_vm0, %v981_v12  ;;  %189 = vst.msk [vmem:[#allocation2 + $0x8] sm:$0xff] %vm154_vm0, %v982_v13  ;;  %vm208_vm5 = vcmp.eq.s32.totalorder %v1286_v2, %v986_v8  ;;  %vm209_vm6 = vcmp.eq.s32.totalorder %v1289_v3, %v986_v8  ;;  %vm221_vm7 = vcmp.eq.s32.totalorder %v1286_v2, %v989_v9  ;;  %v1001_v22 = vld [vmem:[%s1303_s14 + $0x7] ss:$0 sm:$0xff]  ;;  %v1004_v27 = vld [vmem:[%s1303_s14 + $0x8] ss:$0 sm:$0xff] }
  0x33   : >> { %201 = vst.msk [vmem:[#allocation2 + $0x10] sm:$0xff] %vm154_vm0, %v984_v14  ;;  %202 = vst.msk [vmem:[#allocation2 + $0x18] sm:$0xff] %vm154_vm0, %v985_v15  ;;  %vm222_vm8 = vcmp.eq.s32.totalorder %v1289_v3, %v989_v9  ;;  %v987_v18 = vsel %vm208_vm5, 1.0, %v1185_v11  ;;  %v988_v19 = vsel %vm209_vm6, 1.0, %v1185_v11  ;;  %v990_v20 = vsel %vm221_vm7, 1.0, %v1185_v11  ;;  %s174_s10 = sadd.s32 1, %s1180_s10  }
  0x34   : >> { %v991_v21 = vsel %vm222_vm8, 1.0, %v1185_v11  ;;  %214 = vst.msk [vmem:[#allocation2 + $0x20] sm:$0xff] %vm154_vm0, %v987_v18  ;;  %215 = vst.msk [vmem:[#allocation2 + $0x28] sm:$0xff] %vm154_vm0, %v988_v19  ;;  %vm234_vm9 = vcmp.eq.s32.totalorder %v1286_v2, %v992_v10  ;;  %vm235_vm10 = vcmp.eq.s32.totalorder %v1289_v3, %v992_v10  ;;  %vm247_vm11 = vcmp.eq.s32.totalorder %v1286_v2, %v995_v16  ;;  %p171_p3 = scmp.ge.s32.totalorder %s174_s10, 8  }
  0x35   : >> { %227 = vst.msk [vmem:[#allocation2 + $0x30] sm:$0xff] %vm154_vm0, %v990_v20  ;;  %228 = vst.msk [vmem:[#allocation2 + $0x38] sm:$0xff] %vm154_vm0, %v991_v21  ;;  %vm248_vm12 = vcmp.eq.s32.totalorder %v1289_v3, %v995_v16  ;;  %v993_v23 = vsel %vm234_vm9, 1.0, %v1185_v11  ;;  %v994_v24 = vsel %vm235_vm10, 1.0, %v1185_v11  ;;  %v996_v25 = vsel %vm247_vm11, 1.0, %v1185_v11 }
  0x36   : >> { %v997_v26 = vsel %vm248_vm12, 1.0, %v1185_v11  ;;  %240 = vst.msk [vmem:[#allocation2 + $0x40] sm:$0xff] %vm154_vm0, %v993_v23  ;;  %241 = vst.msk [vmem:[#allocation2 + $0x48] sm:$0xff] %vm154_vm0, %v994_v24  ;;  %vm260_vm13 = vcmp.eq.s32.totalorder %v1286_v2, %v998_v17  ;;  %vm261_vm14 = vcmp.eq.s32.totalorder %v1289_v3, %v998_v17  ;;  %vm273_vm15 = vcmp.eq.s32.totalorder %v1286_v2, %v1001_v22 }
  0x37   : >> { %253 = vst.msk [vmem:[#allocation2 + $0x50] sm:$0xff] %vm154_vm0, %v996_v25  ;;  %254 = vst.msk [vmem:[#allocation2 + $0x58] sm:$0xff] %vm154_vm0, %v997_v26  ;;  %vm274_vm1 = vcmp.eq.s32.totalorder %v1289_v3, %v1001_v22  ;;  %v999_v28 = vsel %vm260_vm13, 1.0, %v1185_v11  ;;  %v1000_v29 = vsel %vm261_vm14, 1.0, %v1185_v11  ;;  %v1002_v30 = vsel %vm273_vm15, 1.0, %v1185_v11 }
  0x38   : >> { %v1003_v31 = vsel %vm274_vm1, 1.0, %v1185_v11  ;;  %266 = vst.msk [vmem:[#allocation2 + $0x60] sm:$0xff] %vm154_vm0, %v999_v28  ;;  %267 = vst.msk [vmem:[#allocation2 + $0x68] sm:$0xff] %vm154_vm0, %v1000_v29  ;;  %vm286_vm2 = vcmp.eq.s32.totalorder %v1286_v2, %v1004_v27  ;;  %vm287_vm3 = vcmp.eq.s32.totalorder %v1289_v3, %v1004_v27  ;;  %vm389_vm4 = vcmask 128000  }
  0x39   : >> { %279 = vst.msk [vmem:[#allocation2 + $0x70] sm:$0xff] %vm154_vm0, %v1002_v30  ;;  %280 = vst.msk [vmem:[#allocation2 + $0x78] sm:$0xff] %vm154_vm0, %v1003_v31  ;;  %v296_v32 = vld [vmem:[#allocation2] sm:$0xff]  ;;  %v297_v33 = vld [vmem:[#allocation2 + $0x8] sm:$0xff]  ;;  %v1005_v35 = vsel %vm286_vm2, 1.0, %v1185_v11  ;;  %v1006_v36 = vsel %vm287_vm3, 1.0, %v1185_v11 }
  0x3a   : >> { %v298_v34 = vld [vmem:[#allocation2 + $0x10] sm:$0xff]  ;;  %v1014_v37 = vpack.c.bf16 %v297_v33, %v296_v32  ;;  %v299_v38 = vld [vmem:[#allocation2 + $0x18] sm:$0xff]  ;;  %292 = vst.msk [vmem:[#allocation2 + $0x80] sm:$0xff] %vm154_vm0, %v1005_v35  ;;  %293 = vst.msk [vmem:[#allocation2 + $0x88] sm:$0xff] %vm154_vm0, %v1006_v36  ;;  %v1186_v1 = vmov (%p171_p3), 1966171168  }
  0x3b   : >> { %v1017_v39 = vpack.c.bf16 %v299_v38, %v298_v34  ;;  %v300_v40 = vld [vmem:[#allocation2 + $0x20] sm:$0xff]  ;;  %v301_v41 = vld [vmem:[#allocation2 + $0x28] sm:$0xff]  ;;  %v395_v4 = vunpack.c.l.s4 (%p171_p3), %v1186_v1  ;;  %vm446_vm0 = vcmask (%p171_p3), 122880  }
  0x3c   : >> { %1015 = vmatpush1.bf16.msra.mxu0 %v1014_v37  ;;  %v1020_v42 = vpack.c.bf16 %v301_v41, %v300_v40  ;;  %v302_v43 = vld [vmem:[#allocation2 + $0x30] sm:$0xff]  ;;  %v303_v44 = vld [vmem:[#allocation2 + $0x38] sm:$0xff] }
  0x3d   : >> { %1016 = vmatprep.subr.bf16.mxu0 %v1184_v5  ;;  %v1023_v45 = vpack.c.bf16 %v303_v44, %v302_v43  ;;  %v304_v46 = vld [vmem:[#allocation2 + $0x40] sm:$0xff]  ;;  %v305_v47 = vld [vmem:[#allocation2 + $0x48] sm:$0xff]  ;;  %v396_v9 = vunpack.c.0.s8 (%p171_p3), %v395_v4 }
  0x3e   : >> { %v1026_v48 = vpack.c.bf16 %v305_v47, %v304_v46  ;;  %v306_v49 = vld [vmem:[#allocation2 + $0x50] sm:$0xff]  ;;  %v307_v50 = vld [vmem:[#allocation2 + $0x58] sm:$0xff] }
  0x3f   : >> { %v1029_v51 = vpack.c.bf16 %v307_v50, %v306_v49  ;;  %v308_v52 = vld [vmem:[#allocation2 + $0x60] sm:$0xff]  ;;  %v309_v53 = vld [vmem:[#allocation2 + $0x68] sm:$0xff]  ;;  %v1374_v3 = vsub.s32 (%p171_p3), %v396_v9, %v1286_v2 }
  0x40   : >> { %1018 = vmatpush1.bf16.msra.mxu0 %v1017_v39  ;;  %v1032_v54 = vpack.c.bf16 %v309_v53, %v308_v52  ;;  %v310_v55 = vld [vmem:[#allocation2 + $0x70] sm:$0xff]  ;;  %v311_v56 = vld [vmem:[#allocation2 + $0x78] sm:$0xff] }
  0x41   : >> { %1019 = vmatprep.subr.bf16.mxu0 %v1184_v5  ;;  %v1035_v57 = vpack.c.bf16 %v311_v56, %v310_v55  ;;  %v312_v58 = vld [vmem:[#allocation2 + $0x80] sm:$0xff]  ;;  %v313_v59 = vld [vmem:[#allocation2 + $0x88] sm:$0xff] }
  0x42   : >> { %v1038_v60 = vpack.c.bf16 %v313_v59, %v312_v58 }
  0x44   : >> { %1021 = vmatpush1.bf16.msra.mxu0 %v1020_v42 }
  0x45   : >> { %1022 = vmatprep.subr.bf16.mxu0 %v1184_v5 }
  0x48   : >> { %1024 = vmatpush1.bf16.msra.mxu0 %v1023_v45 }
  0x49   : >> { %1025 = vmatprep.subr.bf16.mxu0 %v1184_v5 }
  0x4c   : >> { %1027 = vmatpush1.bf16.msra.mxu0 %v1026_v48 }
  0x4d   : >> { %1028 = vmatprep.subr.bf16.mxu0 %v1184_v5 }
  0x50   : >> { %1030 = vmatpush1.bf16.msra.mxu0 %v1029_v51 }
  0x51   : >> { %1031 = vmatprep.subr.bf16.mxu0 %v1184_v5 }
  0x54   : >> { %1033 = vmatpush1.bf16.msra.mxu0 %v1032_v54 }
  0x55   : >> { %1034 = vmatprep.subr.bf16.mxu0 %v1184_v5 }
  0x58   : >> { %1036 = vmatpush1.bf16.msra.mxu0 %v1035_v57 }
  0x59   : >> { %1037 = vmatprep.subr.bf16.mxu0 %v1184_v5 }
  0x5c   : >> { %1039 = vmatpush1.bf16.msra.mxu0 %v1038_v60 }
  0x5f   : >> { %382 = vmatmul.mubr.f32.vlgmr.msra.gmra.mrb[0].mxu0 %v294_v61 }
 0x12d   : > { %173 = sbr.rel (!%p171_p3) target bundleno = 45 (0x2d), region = 83 }
 0x132   : >> { %v383_v62 = vpop.f32.mrb[0].mxu0 }
 0x133   : >> { %390 = vst.msk [vmem:[%s388_s23] sm:$0x3f] %vm389_vm4, %v383_v62  ;;  %v385_v63 = vpop.f32.mrb[1].mxu0 }
 0x13a   : > { %v391_v0 = vld [vmem:[#allocation3] sm:$0x3f]  ;;  %v454_v5 = vld [vmem:[#allocation3 + $0x8] sm:$0x3f]  ;;  %v516_v6 = vld [vmem:[#allocation3 + $0x10] sm:$0x3f] }
 0x13b   : > { %v578_v7 = vld [vmem:[#allocation3 + $0x18] sm:$0x3f]  ;;  %v1365_v8 = vld [vmem:[#allocation3 + $0x20] sm:$0x3f]  ;;  %v393_v10 = vcombine.high %v391_v0, %v391_v0  ;;  %v456_v11 = vcombine.high %v454_v5, %v454_v5  ;;  %v1367_v12 = vld [vmem:[#allocation3 + $0x28] sm:$0x3f]  ;;  %v518_v15 = vcombine.high %v516_v6, %v516_v6  ;;  %v400_v21 = vrot.slane %v391_v0, %v1374_v3 }
 0x13c   : > { %v1369_v13 = vld [vmem:[#allocation3 + $0x30] sm:$0x3f]  ;;  %v1371_v14 = vld [vmem:[#allocation3 + $0x38] sm:$0x3f]  ;;  %v580_v16 = vcombine.high %v578_v7, %v578_v7  ;;  %v642_v17 = vcombine.high %v1365_v8, %v1365_v8  ;;  %v704_v18 = vcombine.high %v1367_v12, %v1367_v12  ;;  %v463_v2 = vrot.slane %v454_v5, %v1374_v3 }
 0x13d   : > { %v766_v19 = vcombine.high %v1369_v13, %v1369_v13  ;;  %v828_v20 = vcombine.high %v1371_v14, %v1371_v14  ;;  %v407_v22 = vrot.slane %v393_v10, %v1374_v3  ;;  %v470_v23 = vrot.slane %v456_v11, %v1374_v3 }
 0x13e   : > { %v525_v24 = vrot.slane %v516_v6, %v1374_v3  ;;  %v532_v25 = vrot.slane %v518_v15, %v1374_v3  ;;  %v587_v26 = vrot.slane %v578_v7, %v1374_v3  ;;  %v594_v27 = vrot.slane %v580_v16, %v1374_v3 }
 0x13f   : > { %v416_v28 = vrot.slane %v400_v21, %v1374_v3  ;;  %v408_v29 = vcombine.high %v400_v21, %v400_v21  ;;  %v423_v30 = vrot.slane %v407_v22, %v1374_v3  ;;  %v409_v31 = vcombine.high %v407_v22, %v407_v22 }
 0x140   : > { %v479_v32 = vrot.slane %v463_v2, %v1374_v3  ;;  %v471_v33 = vcombine.high %v463_v2, %v463_v2  ;;  %v486_v34 = vrot.slane %v470_v23, %v1374_v3  ;;  %v472_v35 = vcombine.high %v470_v23, %v470_v23 }
 0x141   : > { %447 = vst.msk [vmem:[%s1267_s5] sm:$0x1] %vm446_vm0, %v416_v28  ;;  %v430_v36 = vrot.slane %v408_v29, %v1374_v3  ;;  %v438_v37 = vcombine.high %v416_v28, %v416_v28  ;;  %451 = vst.msk [vmem:[%s1267_s5 + $0x20] sm:$0x1] %vm446_vm0, %v423_v30  ;;  %v437_v38 = vrot.slane %v409_v31, %v1374_v3 }
 0x142   : > { %v541_v39 = vrot.slane %v525_v24, %v1374_v3  ;;  %509 = vst.msk [vmem:[%s1267_s5 + $0x1] sm:$0x1] %vm446_vm0, %v479_v32  ;;  %v493_v40 = vrot.slane %v471_v33, %v1374_v3  ;;  %v501_v41 = vcombine.high %v479_v32, %v479_v32  ;;  %513 = vst.msk [vmem:[%s1267_s5 + $0x21] sm:$0x1] %vm446_vm0, %v486_v34 }
 0x143   : > { %v500_v42 = vrot.slane %v472_v35, %v1374_v3  ;;  %v533_v43 = vcombine.high %v525_v24, %v525_v24  ;;  %448 = vst.msk [vmem:[%s1267_s5 + $0x8] sm:$0x1] %vm446_vm0, %v430_v36  ;;  %449 = vst.msk [vmem:[%s1267_s5 + $0x10] sm:$0x1] %vm446_vm0, %v438_v37  ;;  %v439_v44 = vcombine.high %v430_v36, %v430_v36 }
 0x144   : > { %452 = vst.msk [vmem:[%s1267_s5 + $0x28] sm:$0x1] %vm446_vm0, %v437_v38  ;;  %571 = vst.msk [vmem:[%s1267_s5 + $0x2] sm:$0x1] %vm446_vm0, %v541_v39  ;;  %v563_v45 = vcombine.high %v541_v39, %v541_v39  ;;  %v548_v46 = vrot.slane %v532_v25, %v1374_v3  ;;  %v534_v47 = vcombine.high %v532_v25, %v532_v25 }
 0x145   : > { %510 = vst.msk [vmem:[%s1267_s5 + $0x9] sm:$0x1] %vm446_vm0, %v493_v40  ;;  %511 = vst.msk [vmem:[%s1267_s5 + $0x11] sm:$0x1] %vm446_vm0, %v501_v41  ;;  %v502_v48 = vcombine.high %v493_v40, %v493_v40  ;;  %v555_v49 = vrot.slane %v533_v43, %v1374_v3  ;;  %v603_v50 = vrot.slane %v587_v26, %v1374_v3 }
 0x146   : > { %514 = vst.msk [vmem:[%s1267_s5 + $0x29] sm:$0x1] %vm446_vm0, %v500_v42  ;;  %v595_v51 = vcombine.high %v587_v26, %v587_v26  ;;  %450 = vst.msk [vmem:[%s1267_s5 + $0x18] sm:$0x1] %vm446_vm0, %v439_v44  ;;  %v562_v52 = vrot.slane %v534_v47, %v1374_v3  ;;  %v610_v53 = vrot.slane %v594_v27, %v1374_v3 }
 0x147   : > { %573 = vst.msk [vmem:[%s1267_s5 + $0x12] sm:$0x1] %vm446_vm0, %v563_v45  ;;  %575 = vst.msk [vmem:[%s1267_s5 + $0x22] sm:$0x1] %vm446_vm0, %v548_v46  ;;  %v596_v54 = vcombine.high %v594_v27, %v594_v27  ;;  %v649_v55 = vrot.slane %v1365_v8, %v1374_v3  ;;  %v564_v56 = vcombine.high %v555_v49, %v555_v49 }
 0x148   : > { %512 = vst.msk [vmem:[%s1267_s5 + $0x19] sm:$0x1] %vm446_vm0, %v502_v48  ;;  %572 = vst.msk [vmem:[%s1267_s5 + $0xa] sm:$0x1] %vm446_vm0, %v555_v49  ;;  %v617_v57 = vrot.slane %v595_v51, %v1374_v3  ;;  %v625_v58 = vcombine.high %v603_v50, %v603_v50  ;;  %v656_v59 = vrot.slane %v642_v17, %v1374_v3 }
 0x149   : > { %633 = vst.msk [vmem:[%s1267_s5 + $0x3] sm:$0x1] %vm446_vm0, %v603_v50  ;;  %576 = vst.msk [vmem:[%s1267_s5 + $0x2a] sm:$0x1] %vm446_vm0, %v562_v52  ;;  %v624_v60 = vrot.slane %v596_v54, %v1374_v3  ;;  %v665_v61 = vrot.slane %v649_v55, %v1374_v3  ;;  %v657_v62 = vcombine.high %v649_v55, %v649_v55 }
 0x14a   : > { %637 = vst.msk [vmem:[%s1267_s5 + $0x23] sm:$0x1] %vm446_vm0, %v610_v53  ;;  %v711_v63 = vrot.slane %v1367_v12, %v1374_v3  ;;  %574 = vst.msk [vmem:[%s1267_s5 + $0x1a] sm:$0x1] %vm446_vm0, %v564_v56  ;;  %v626_v0 = vcombine.high %v617_v57, %v617_v57  ;;  %v672_v1 = vrot.slane %v656_v59, %v1374_v3 }
 0x14b   : > { %634 = vst.msk [vmem:[%s1267_s5 + $0xb] sm:$0x1] %vm446_vm0, %v617_v57  ;;  %635 = vst.msk [vmem:[%s1267_s5 + $0x13] sm:$0x1] %vm446_vm0, %v625_v58  ;;  %v658_v4 = vcombine.high %v656_v59, %v656_v59  ;;  %v718_v5 = vrot.slane %v704_v18, %v1374_v3  ;;  %v679_v6 = vrot.slane %v657_v62, %v1374_v3 }
 0x14c   : > { %638 = vst.msk [vmem:[%s1267_s5 + $0x2b] sm:$0x1] %vm446_vm0, %v624_v60  ;;  %695 = vst.msk [vmem:[%s1267_s5 + $0x4] sm:$0x1] %vm446_vm0, %v665_v61  ;;  %v687_v7 = vcombine.high %v665_v61, %v665_v61  ;;  %v727_v8 = vrot.slane %v711_v63, %v1374_v3  ;;  %v719_v9 = vcombine.high %v711_v63, %v711_v63 }
 0x14d   : > { %636 = vst.msk [vmem:[%s1267_s5 + $0x1b] sm:$0x1] %vm446_vm0, %v626_v0  ;;  %699 = vst.msk [vmem:[%s1267_s5 + $0x24] sm:$0x1] %vm446_vm0, %v672_v1  ;;  %v686_v10 = vrot.slane %v658_v4, %v1374_v3  ;;  %v734_v11 = vrot.slane %v718_v5, %v1374_v3  ;;  %v720_v12 = vcombine.high %v718_v5, %v718_v5 }
 0x14e   : > { %v773_v15 = vrot.slane %v1369_v13, %v1374_v3  ;;  %696 = vst.msk [vmem:[%s1267_s5 + $0xc] sm:$0x1] %vm446_vm0, %v679_v6  ;;  %697 = vst.msk [vmem:[%s1267_s5 + $0x14] sm:$0x1] %vm446_vm0, %v687_v7  ;;  %v688_v16 = vcombine.high %v679_v6, %v679_v6  ;;  %v741_v17 = vrot.slane %v719_v9, %v1374_v3 }
 0x14f   : > { %757 = vst.msk [vmem:[%s1267_s5 + $0x5] sm:$0x1] %vm446_vm0, %v727_v8  ;;  %v749_v18 = vcombine.high %v727_v8, %v727_v8  ;;  %v780_v21 = vrot.slane %v766_v19, %v1374_v3  ;;  %700 = vst.msk [vmem:[%s1267_s5 + $0x2c] sm:$0x1] %vm446_vm0, %v686_v10  ;;  %v748_v22 = vrot.slane %v720_v12, %v1374_v3 }
 0x150   : > { %761 = vst.msk [vmem:[%s1267_s5 + $0x25] sm:$0x1] %vm446_vm0, %v734_v11  ;;  %v789_v2 = vrot.slane %v773_v15, %v1374_v3  ;;  %v781_v23 = vcombine.high %v773_v15, %v773_v15  ;;  %v835_v24 = vrot.slane %v1371_v14, %v1374_v3  ;;  %698 = vst.msk [vmem:[%s1267_s5 + $0x1c] sm:$0x1] %vm446_vm0, %v688_v16 }
 0x151   : > { %758 = vst.msk [vmem:[%s1267_s5 + $0xd] sm:$0x1] %vm446_vm0, %v741_v17  ;;  %759 = vst.msk [vmem:[%s1267_s5 + $0x15] sm:$0x1] %vm446_vm0, %v749_v18  ;;  %v750_v13 = vcombine.high %v741_v17, %v741_v17  ;;  %v796_v19 = vrot.slane %v780_v21, %v1374_v3  ;;  %v782_v25 = vcombine.high %v780_v21, %v780_v21 }
 0x152   : > { %v842_v26 = vrot.slane %v828_v20, %v1374_v3  ;;  %762 = vst.msk [vmem:[%s1267_s5 + $0x2d] sm:$0x1] %vm446_vm0, %v748_v22  ;;  %819 = vst.msk [vmem:[%s1267_s5 + $0x6] sm:$0x1] %vm446_vm0, %v789_v2  ;;  %v803_v27 = vrot.slane %v781_v23, %v1374_v3  ;;  %v811_v28 = vcombine.high %v789_v2, %v789_v2 }
 0x153   : > { %v851_v29 = vrot.slane %v835_v24, %v1374_v3  ;;  %v843_v30 = vcombine.high %v835_v24, %v835_v24  ;;  %760 = vst.msk [vmem:[%s1267_s5 + $0x1d] sm:$0x1] %vm446_vm0, %v750_v13  ;;  %823 = vst.msk [vmem:[%s1267_s5 + $0x26] sm:$0x1] %vm446_vm0, %v796_v19  ;;  %v810_v14 = vrot.slane %v782_v25, %v1374_v3 }
 0x154   : > { %v858_v20 = vrot.slane %v842_v26, %v1374_v3  ;;  %v844_v31 = vcombine.high %v842_v26, %v842_v26  ;;  %820 = vst.msk [vmem:[%s1267_s5 + $0xe] sm:$0x1] %vm446_vm0, %v803_v27  ;;  %821 = vst.msk [vmem:[%s1267_s5 + $0x16] sm:$0x1] %vm446_vm0, %v811_v28  ;;  %v812_v32 = vcombine.high %v803_v27, %v803_v27 }
 0x155   : > { %881 = vst.msk [vmem:[%s1267_s5 + $0x7] sm:$0x1] %vm446_vm0, %v851_v29  ;;  %v865_v33 = vrot.slane %v843_v30, %v1374_v3  ;;  %v873_v34 = vcombine.high %v851_v29, %v851_v29  ;;  %824 = vst.msk [vmem:[%s1267_s5 + $0x2e] sm:$0x1] %vm446_vm0, %v810_v14 }
 0x156   : > { %885 = vst.msk [vmem:[%s1267_s5 + $0x27] sm:$0x1] %vm446_vm0, %v858_v20  ;;  %v872_v35 = vrot.slane %v844_v31, %v1374_v3  ;;  %822 = vst.msk [vmem:[%s1267_s5 + $0x1e] sm:$0x1] %vm446_vm0, %v812_v32 }
 0x157   : > { %882 = vst.msk [vmem:[%s1267_s5 + $0xf] sm:$0x1] %vm446_vm0, %v865_v33  ;;  %883 = vst.msk [vmem:[%s1267_s5 + $0x17] sm:$0x1] %vm446_vm0, %v873_v34  ;;  %v874_v36 = vcombine.high %v865_v33, %v865_v33 }
 0x158   : > { %886 = vst.msk [vmem:[%s1267_s5 + $0x2f] sm:$0x1] %vm446_vm0, %v872_v35 }
 0x159   : > { %884 = vst.msk [vmem:[%s1267_s5 + $0x1f] sm:$0x1] %vm446_vm0, %v874_v36 }
 0x15a PF: > { %s1009_s24 = sshll.u32 %s1235_s20, 7  ;;  %s900_s6 = sshll.u32 %s1267_s5, 4  ;;  %s1548_s6 = int_to_ptr.vmem [resolvable:$true] %s900_s6 }
 0x15b   : > { %s1545_s4 = scalar_lea.hbm %s1596_s3, %s1009_s24  ;;  %s1552_s7 = scalar_lea.sflag [#allocation7], %s144_s28 }
 0x15c   : > { %s1108_s8 = scalar_lea.vmem %s1548_s6, 768  ;;  %s1187_s20 = smov [#allocation6]  }
 0x15d   : > { %p1109_p4 = scmp.ne.s32.totalorder %s1548_s6, %s1108_s8  ;;  %s1112_s9 = sshll.u32 %s1187_s20, 4  ;;  %s1113_s9 = int_to_ptr.vmem [resolvable:$false] %s1112_s9 }
 0x15e   : > { %s1114_s10 = scalar_lea.vmem %s1113_s9, 1536  ;;  %p1115_p7 = scmp.lt.s32.totalorder %s1548_s6, %s1113_s9 }
 0x15f   : > { %p1110_p5 = pnand %p1109_p4, %p1252_p10  ;;  %p1116_p8 = scmp.lt.s32.totalorder %s1114_s10, %s1108_s8 }
 0x161   : > { %p1111_p6 = pneg %p1110_p5  ;;  %p1117_p9 = por %p1116_p8, %p1115_p7 }
 0x163   : > { %p1118_p12 = pnand %p1117_p9, %p1111_p6 }
 0x165   : > { %1121 = shalt.err (!%p1118_p12)
}
 0x166   : > { %s1122_s28 = scalar_lea.hbm %s1545_s4, 768  ;;  %s1126_s12 = scalar_lea.hbm %s1596_s3, 1536 }
 0x167   : > { %p1123_p13 = scmp.ne.s32.totalorder %s1545_s4, %s1122_s28  ;;  %p1127_p2 = scmp.lt.u32.totalorder %s1545_s4, %s1596_s3 }
 0x168   : > { %p1128_p3 = scmp.lt.u32.totalorder %s1126_s12, %s1122_s28  ;;  %p1130_p5 = scmp.lt.u32.totalorder %s1122_s28, %s1545_s4 }
 0x169   : > { %p1124_p0 = pnand %p1123_p13, %p1252_p10 }
 0x16a   : > { %p1129_p4 = por %p1128_p3, %p1127_p2 }
 0x16b   : > { %p1125_p1 = pneg %p1124_p0 }
 0x16c   : > { %p1131_p6 = por %p1130_p5, %p1129_p4 }
 0x16e   : > { %p1132_p7 = pnand %p1131_p6, %p1125_p1 }
 0x170   : > { %1135 = shalt.err (!%p1132_p7)
}
 0x171   : > { %s1188_s15 = smov 128   ;;  %s1189_s16 = smov 256  }
 0x172   : > { %s1190_s21 = smov 8  }
 0x173   : > { %1041 = dma.vmem_to_hbm [thread:$0]  (%p1252_p10), %s1548_s6, 768, %s1545_s4, %s1552_s7, %s1188_s15, %s1189_s16, %s1190_s21  }
 0x174 PF: > { %p1047_p8 = scmp.ge.s32.totalorder %s1176_s19, 2  ;;  %s915_s23 = sand.u32 1, %s1164_s17  }
 0x175   : > { %s916_s24 = scalar_lea.sflag [#allocation7], %s915_s23 }
 0x176   : > { %p1044_p9 = pnand %p1047_p8, %p1256_p11 }
 0x178   : > { %1159 = dma.done.wait (!%p1044_p9), %s916_s24, 768  }
 0x179   : > { %1161 = vsyncadd (!%p1044_p9), %s916_s24, 4294966528  ;;  %p19_p12 = scmp.ge.s32.totalorder %s1239_s22, 4   ;;  %s1599_s17 = smov %s1168_s18 }
 0x17a   : > { %s1600_s18 = smov %s1172_s0  ;;  %s1601_s0 = smov %s1250_s25 }
 0x17b   : > { %s1602_s19 = smov %s1239_s22  ;;  %21 = sbr.rel (!%p19_p12) target bundleno = 18 (0x12), region = 94 }
 0x182   :  { %921 = vsyncpa [#allocation7], 1 }
 0x183   :  { %923 = vsyncpa [#allocation7 + $0x1], 1 }

</bundles_post_ra>
